<compile_context>
chip_gen: v5e
topology: v5e:2x2
jax: 0.10.0
libtpu: 0.0.40
codegen_flags: <defaults>
</compile_context>

<pallas_src>
import functools
import math

import jax
import jax.numpy as jnp
from jax.experimental import pallas as pl
from jax.experimental.pallas import tpu as pltpu


# ----------------------------------------------------------------------------
# Pass 1: 3x3 conv (stride 1, pad 1) + bias, fused with per-batch BatchNorm
# partial statistics.  One grid step = one batch element.
# ----------------------------------------------------------------------------
def conv3x3_stats_kernel(x_ref, w_ref, b_ref, widx_ref,
                         y_ref, sum_ref, sq_ref, *, H, W):
    # x_ref   : (1, Cin, N)    f32  conv input, pixel (h*W+w) on the lane axis
    # w_ref   : (Cout, 9*Cin)  bf16 im2col weights, row = (kh*3+kw)*Cin + ci
    # b_ref   : (Cout, 1)      f32  conv bias
    # widx_ref: (1, N)         i32  pixel column index w = pix % W (precomputed)
    # y_ref   : (1, Cout, N)   f32  conv(+bias) output, channels on sublanes
    # sum_ref : (1, Cout, 1)   f32  per-batch per-channel sum(y)
    # sq_ref  : (1, Cout, 1)   f32  per-batch per-channel sum(y*y)
    N = H * W
    x = x_ref[0]                                             # (Cin, N)
    pix = jax.lax.broadcasted_iota(jnp.int32, (1, N), 1)     # flattened pixel id
    w_idx = widx_ref[...]                                    # (1, N)

    # Build the 9 shifted taps on the flattened pixel axis.  A circular shift
    # by s = oh*W + ow (XLU roll, no reshape/relayout) plus a boundary mask
    # reproduces zero padding; every wrapped element falls under a mask.
    taps = []
    for kh in range(3):
        for kw in range(3):
            oh, ow = kh - 1, kw - 1
            s = oh * W + ow
            tap = x if s == 0 else pltpu.roll(x, (-s) % N, axis=1)
            mask = None
            if oh == -1:
                mask = pix >= W                       # needs h-1 >= 0
            elif oh == 1:
                mask = pix < (H - 1) * W              # needs h+1 <= H-1
            if ow == -1:
                m = w_idx >= 1                        # needs w-1 >= 0
                mask = m if mask is None else (mask & m)
            elif ow == 1:
                m = w_idx <= W - 2                    # needs w+1 <= W-1
                mask = m if mask is None else (mask & m)
            if mask is not None:
                tap = jnp.where(mask, tap, jnp.zeros_like(tap))
            taps.append(tap)

    # im2col matrix -> single bf16 MXU dot (K = 9*Cin), f32 accumulation.
    patches = jnp.concatenate(taps, axis=0).astype(jnp.bfloat16)  # (9*Cin, N)
    acc = jnp.dot(w_ref[...], patches,
                  preferred_element_type=jnp.float32)             # (Cout, N)
    acc = acc + b_ref[...]                                        # bias bcast

    y_ref[0] = acc
    # Fused BatchNorm partial statistics (training-mode batch statistics).
    sum_ref[0] = jnp.sum(acc, axis=1, keepdims=True)
    sq_ref[0] = jnp.sum(acc * acc, axis=1, keepdims=True)


def conv3x3_stats(x_flat, w2, bias, H, W):
    B, Cin, N = x_flat.shape
    Cout = w2.shape[0]
    w_idx = (jnp.arange(N, dtype=jnp.int32) % W).reshape(1, N)
    b2 = bias.astype(jnp.float32).reshape(Cout, 1)
    # TODO(synk): for large images, row-tile this grid with a 1-row halo
    # (clamped index_map + masked edge taps) so VMEM stays bounded (v7x: 64 MiB)
    # and the DMA pipeline gets more than B steps to overlap.
    return pl.pallas_call(
        functools.partial(conv3x3_stats_kernel, H=H, W=W),
        out_shape=(jax.ShapeDtypeStruct((B, Cout, N), jnp.float32),
                   jax.ShapeDtypeStruct((B, Cout, 1), jnp.float32),
                   jax.ShapeDtypeStruct((B, Cout, 1), jnp.float32)),
        grid=(B,),
        in_specs=[
            pl.BlockSpec((1, Cin, N), lambda b: (b, 0, 0)),
            pl.BlockSpec((Cout, 9 * Cin), lambda b: (0, 0)),
            pl.BlockSpec((Cout, 1), lambda b: (0, 0)),
            pl.BlockSpec((1, N), lambda b: (0, 0)),
        ],
        out_specs=(
            pl.BlockSpec((1, Cout, N), lambda b: (b, 0, 0)),
            pl.BlockSpec((1, Cout, 1), lambda b: (b, 0, 0)),
            pl.BlockSpec((1, Cout, 1), lambda b: (b, 0, 0)),
        ),
        compiler_params=pltpu.CompilerParams(dimension_semantics=("parallel",)),
    )(x_flat, w2, b2, w_idx)


# ----------------------------------------------------------------------------
# Pass 2: fused BatchNorm affine-normalize + ReLU + Lorentz time coordinate.
# Grid = (batch, lane-chunks); both axes parallel (covers v7x's 2 TensorCores).
# ----------------------------------------------------------------------------
def bn_relu_time_kernel(y_ref, scale_ref, shift_ref, time_ref, space_ref, *, c):
    # y_ref: (1, Cout, NT) f32 ; scale/shift: (Cout, 1) f32 broadcast over lanes
    z = y_ref[0] * scale_ref[...] + shift_ref[...]
    r = jnp.maximum(z, 0.0)                                   # ReLU (HypLayer 3)
    ss = jnp.sum(r * r, axis=0, keepdims=True)                # (1, NT) sublane reduce
    time_ref[0] = jnp.sqrt(jnp.maximum(ss + c, 1e-6))         # EUP sqrt
    space_ref[0] = r


def _pick_chunk(n, cap=2048):
    # Full pixel row if it fits; otherwise the largest 128-multiple divisor
    # <= cap (keeps tiles lane-dense and bounds per-step VMEM on v7x).
    if n <= cap:
        return n
    for cands in range(cap - cap % 128, 127, -128):
        if n % cands == 0:
            return cands
    return n


def bn_relu_time(y, scale, shift, c):
    B, Cout, N = y.shape
    NT = _pick_chunk(N)
    return pl.pallas_call(
        functools.partial(bn_relu_time_kernel, c=float(c)),
        out_shape=(jax.ShapeDtypeStruct((B, 1, N), jnp.float32),
                   jax.ShapeDtypeStruct((B, Cout, N), jnp.float32)),
        grid=(B, N // NT),
        in_specs=[
            pl.BlockSpec((1, Cout, NT), lambda b, t: (b, 0, t)),
            pl.BlockSpec((Cout, 1), lambda b, t: (0, 0)),
            pl.BlockSpec((Cout, 1), lambda b, t: (0, 0)),
        ],
        out_specs=(
            pl.BlockSpec((1, 1, NT), lambda b, t: (b, 0, t)),
            pl.BlockSpec((1, Cout, NT), lambda b, t: (b, 0, t)),
        ),
        compiler_params=pltpu.CompilerParams(
            dimension_semantics=("parallel", "parallel")),
    )(y, scale, shift)


# ----------------------------------------------------------------------------
# Full module forward (Pallas kernels + tiny XLA glue for layout / BN scalars).
# ----------------------------------------------------------------------------
def midpoint_input_block(x_nchw, w_oihw, bias, gamma, beta, c, eps=1e-5):
    B, Cin, H, W = x_nchw.shape
    Cout = w_oihw.shape[0]
    N = H * W

    # pad(1,0) + manifold.projx only add a time coord that HypLayer1 drops.
    # The module's permutes make the conv run on the spatially transposed
    # image; instead of transposing the activation we spatially transpose the
    # 3x3 kernel (tiny) and transpose once on the final output.
    x_flat = x_nchw.astype(jnp.float32).reshape(B, Cin, N)     # pixels -> lanes
    # w2[co, (kh*3+kw)*Cin + ci] = w[co, ci, kw, kh]
    w2 = jnp.transpose(w_oihw, (3, 2, 1, 0)).reshape(9 * Cin, Cout).T
    w2 = w2.astype(jnp.bfloat16)

    # HypLayer 1 (+ fused BN partial stats): conv3x3 + bias.
    y, psum, psq = conv3x3_stats(x_flat, w2, bias, H, W)

    # HypLayer 2: BatchNorm2d training-mode batch statistics (biased variance).
    # NOTE: E[y^2]-E[y]^2 in f32; fine at these sizes — switch to a shifted /
    # two-pass form if B*H*W gets large with tiny per-channel variance.
    n_el = B * N
    mean = jnp.sum(psum[:, :, 0], axis=0) / n_el
    var = jnp.maximum(jnp.sum(psq[:, :, 0], axis=0) / n_el - mean * mean, 0.0)
    scale_v = gamma.astype(jnp.float32) / jnp.sqrt(var + eps)
    shift_v = beta.astype(jnp.float32) - mean * scale_v

    # HypLayer 2 normalize + HypLayer 3 ReLU + final Lorentz time coordinate.
    time_o, space_o = bn_relu_time(y, scale_v.reshape(Cout, 1),
                                   shift_v.reshape(Cout, 1), c)

    # Module output layout: (B, W, H, Cout+1), channels-last.
    full = jnp.concatenate([time_o.reshape(B, 1, H, W),
                            space_o.reshape(B, Cout, H, W)], axis=1)
    return jnp.transpose(full, (0, 3, 2, 1))


# ----------------------------------------------------------------------------
# Pure-JAX reference that mirrors the torch code op-by-op (for self-check).
# ----------------------------------------------------------------------------
def reference_forward(x_nchw, w_oihw, bias, gamma, beta, c, eps=1e-5):
    x = jnp.transpose(x_nchw, (0, 2, 3, 1))                    # NHWC
    x_space = x                                                # pad+projx time is dropped
    conv_in = jnp.transpose(x_space, (0, 3, 2, 1))             # (B, Cin, W, H)
    y = jax.lax.conv_general_dilated(conv_in, w_oihw, (1, 1),
                                     ((1, 1), (1, 1)),
                                     dimension_numbers=("NCHW", "OIHW", "NCHW"))
    y = y + bias[None, :, None, None]
    s1 = jnp.transpose(y, (0, 2, 3, 1))                        # (B, W, H, Cout)
    t = jnp.transpose(s1, (0, 3, 2, 1))                        # (B, Cout, H, W)
    mean = jnp.mean(t, axis=(0, 2, 3), keepdims=True)
    var = jnp.var(t, axis=(0, 2, 3), keepdims=True)            # biased (train mode)
    bn = (t - mean) / jnp.sqrt(var + eps) * gamma[None, :, None, None] \
         + beta[None, :, None, None]
    s2 = jnp.transpose(bn, (0, 2, 3, 1))                       # (B, H, W, Cout)
    u = jnp.transpose(s2, (0, 3, 2, 1))                        # (B, Cout, W, H)
    r = jnp.maximum(u, 0.0)
    s3 = jnp.transpose(r, (0, 2, 3, 1))                        # (B, W, H, Cout)
    t3 = jnp.sqrt(jnp.maximum(jnp.sum(s3 * s3, -1, keepdims=True) + c, 1e-6))
    return jnp.concatenate([t3, s3], axis=-1)                  # (B, W, H, Cout+1)


if __name__ == "__main__":
    B, IMG_DIM, IN_CH, H, W = 2, 4, 8, 16, 16
    C_CURV = 1.0

    key = jax.random.PRNGKey(0)
    kx, kw, kb = jax.random.split(key, 3)
    x = jax.random.normal(kx, (B, IMG_DIM, H, W), jnp.float32)

    # Deterministic parameter init (Conv2d kaiming-uniform-style bounds).
    bound = 1.0 / math.sqrt(IMG_DIM * 3 * 3)
    w_oihw = jax.random.uniform(kw, (IN_CH, IMG_DIM, 3, 3), jnp.float32, -bound, bound)
    bias = jax.random.uniform(kb, (IN_CH,), jnp.float32, -bound, bound)
    gamma = jnp.ones((IN_CH,), jnp.float32)    # BatchNorm2d default weight
    beta = jnp.zeros((IN_CH,), jnp.float32)    # BatchNorm2d default bias

    out = midpoint_input_block(x, w_oihw, bias, gamma, beta, C_CURV)
    out = jax.block_until_ready(out)
    assert out.shape == (B, W, H, IN_CH + 1), out.shape

    ref = reference_forward(x, w_oihw, bias, gamma, beta, C_CURV)
    err = float(jnp.max(jnp.abs(out - ref)))
    # Tolerance covers bf16 MXU operands (f32 accumulation) vs f32 reference.
    assert err < 1e-1, f"max abs error vs reference: {err}"

    print("KERNEL_OK")
</pallas_src>

<mosaic_0001>
module attributes {stable_mosaic.version = 11 : i64} {
  func.func @conv3x3_stats_kernel(%arg0: i32, %arg1: memref<1x4x256xf32, #tpu.memory_space<vmem>>, %arg2: memref<8x36xbf16, #tpu.memory_space<vmem>>, %arg3: memref<8x1xf32, #tpu.memory_space<vmem>>, %arg4: memref<1x256xi32, #tpu.memory_space<vmem>>, %arg5: memref<1x8x256xf32, #tpu.memory_space<vmem>>, %arg6: memref<1x8x1xf32, #tpu.memory_space<vmem>>, %arg7: memref<1x8x1xf32, #tpu.memory_space<vmem>>) attributes {dimension_semantics = [#tpu.dimension_semantics<parallel>], iteration_bounds = array<i64: 2>, scalar_prefetch = 0 : i64, scratch_operands = 0 : i64, tpu.core_type = #tpu.core_type<tc>, window_params = [{transform_indices = @transform_0, window_bounds = array<i64: 1, 4, 256>}, {pipeline_mode = #tpu.pipeline_mode<synchronous>, transform_indices = @transform_1, window_bounds = array<i64: 8, 36>}, {pipeline_mode = #tpu.pipeline_mode<synchronous>, transform_indices = @transform_2, window_bounds = array<i64: 8, 1>}, {pipeline_mode = #tpu.pipeline_mode<synchronous>, transform_indices = @transform_3, window_bounds = array<i64: 1, 256>}, {transform_indices = @transform_4, window_bounds = array<i64: 1, 8, 256>}, {transform_indices = @transform_5, window_bounds = array<i64: 1, 8, 1>}, {transform_indices = @transform_6, window_bounds = array<i64: 1, 8, 1>}]} {
    %c0 = arith.constant 0 : index
    %c0_0 = arith.constant 0 : index
    %c0_1 = arith.constant 0 : index
    %0 = vector.load %arg1[%c0, %c0_0, %c0_1] : memref<1x4x256xf32, #tpu.memory_space<vmem>>, vector<1x4x256xf32>
    %1 = vector.shape_cast %0 : vector<1x4x256xf32> to vector<4x256xf32>
    %2 = tpu.iota {dimensions = array<i32: 1>} : vector<1x256xi32>
    %c0_2 = arith.constant 0 : index
    %c0_3 = arith.constant 0 : index
    %3 = vector.load %arg4[%c0_2, %c0_3] : memref<1x256xi32, #tpu.memory_space<vmem>>, vector<1x256xi32>
    %c17_i32 = arith.constant 17 : i32
    %4 = tpu.dynamic_rotate %1 by %c17_i32 dim 1 : vector<4x256xf32>, i32 -> vector<4x256xf32>
    %c16_i32 = arith.constant 16 : i32
    %5 = vector.broadcast %c16_i32 : i32 to vector<1x256xi32>
    %6 = arith.cmpi sge, %2, %5 : vector<1x256xi32>
    %c1_i32 = arith.constant 1 : i32
    %7 = vector.broadcast %c1_i32 : i32 to vector<1x256xi32>
    %8 = arith.cmpi sge, %3, %7 : vector<1x256xi32>
    %9 = arith.andi %6, %8 : vector<1x256xi1>
    %cst = arith.constant 0.000000e+00 : f32
    %10 = vector.broadcast %cst : f32 to vector<4x256xf32>
    %11 = vector.shape_cast %9 : vector<1x256xi1> to vector<1x256xi1>
    %12 = vector.broadcast %11 : vector<1x256xi1> to vector<4x256xi1>
    %13 = arith.select %12, %4, %10 : vector<4x256xi1>, vector<4x256xf32>
    %c16_i32_4 = arith.constant 16 : i32
    %14 = tpu.dynamic_rotate %1 by %c16_i32_4 dim 1 : vector<4x256xf32>, i32 -> vector<4x256xf32>
    %c16_i32_5 = arith.constant 16 : i32
    %15 = vector.broadcast %c16_i32_5 : i32 to vector<1x256xi32>
    %16 = arith.cmpi sge, %2, %15 : vector<1x256xi32>
    %cst_6 = arith.constant 0.000000e+00 : f32
    %17 = vector.broadcast %cst_6 : f32 to vector<4x256xf32>
    %18 = vector.shape_cast %16 : vector<1x256xi1> to vector<1x256xi1>
    %19 = vector.broadcast %18 : vector<1x256xi1> to vector<4x256xi1>
    %20 = arith.select %19, %14, %17 : vector<4x256xi1>, vector<4x256xf32>
    %c15_i32 = arith.constant 15 : i32
    %21 = tpu.dynamic_rotate %1 by %c15_i32 dim 1 : vector<4x256xf32>, i32 -> vector<4x256xf32>
    %c16_i32_7 = arith.constant 16 : i32
    %22 = vector.broadcast %c16_i32_7 : i32 to vector<1x256xi32>
    %23 = arith.cmpi sge, %2, %22 : vector<1x256xi32>
    %c14_i32 = arith.constant 14 : i32
    %24 = vector.broadcast %c14_i32 : i32 to vector<1x256xi32>
    %25 = arith.cmpi sle, %3, %24 : vector<1x256xi32>
    %26 = arith.andi %23, %25 : vector<1x256xi1>
    %cst_8 = arith.constant 0.000000e+00 : f32
    %27 = vector.broadcast %cst_8 : f32 to vector<4x256xf32>
    %28 = vector.shape_cast %26 : vector<1x256xi1> to vector<1x256xi1>
    %29 = vector.broadcast %28 : vector<1x256xi1> to vector<4x256xi1>
    %30 = arith.select %29, %21, %27 : vector<4x256xi1>, vector<4x256xf32>
    %c1_i32_9 = arith.constant 1 : i32
    %31 = tpu.dynamic_rotate %1 by %c1_i32_9 dim 1 : vector<4x256xf32>, i32 -> vector<4x256xf32>
    %c1_i32_10 = arith.constant 1 : i32
    %32 = vector.broadcast %c1_i32_10 : i32 to vector<1x256xi32>
    %33 = arith.cmpi sge, %3, %32 : vector<1x256xi32>
    %cst_11 = arith.constant 0.000000e+00 : f32
    %34 = vector.broadcast %cst_11 : f32 to vector<4x256xf32>
    %35 = vector.shape_cast %33 : vector<1x256xi1> to vector<1x256xi1>
    %36 = vector.broadcast %35 : vector<1x256xi1> to vector<4x256xi1>
    %37 = arith.select %36, %31, %34 : vector<4x256xi1>, vector<4x256xf32>
    %c255_i32 = arith.constant 255 : i32
    %38 = tpu.dynamic_rotate %1 by %c255_i32 dim 1 : vector<4x256xf32>, i32 -> vector<4x256xf32>
    %c14_i32_12 = arith.constant 14 : i32
    %39 = vector.broadcast %c14_i32_12 : i32 to vector<1x256xi32>
    %40 = arith.cmpi sle, %3, %39 : vector<1x256xi32>
    %cst_13 = arith.constant 0.000000e+00 : f32
    %41 = vector.broadcast %cst_13 : f32 to vector<4x256xf32>
    %42 = vector.shape_cast %40 : vector<1x256xi1> to vector<1x256xi1>
    %43 = vector.broadcast %42 : vector<1x256xi1> to vector<4x256xi1>
    %44 = arith.select %43, %38, %41 : vector<4x256xi1>, vector<4x256xf32>
    %c241_i32 = arith.constant 241 : i32
    %45 = tpu.dynamic_rotate %1 by %c241_i32 dim 1 : vector<4x256xf32>, i32 -> vector<4x256xf32>
    %c240_i32 = arith.constant 240 : i32
    %46 = vector.broadcast %c240_i32 : i32 to vector<1x256xi32>
    %47 = arith.cmpi slt, %2, %46 : vector<1x256xi32>
    %c1_i32_14 = arith.constant 1 : i32
    %48 = vector.broadcast %c1_i32_14 : i32 to vector<1x256xi32>
    %49 = arith.cmpi sge, %3, %48 : vector<1x256xi32>
    %50 = arith.andi %47, %49 : vector<1x256xi1>
    %cst_15 = arith.constant 0.000000e+00 : f32
    %51 = vector.broadcast %cst_15 : f32 to vector<4x256xf32>
    %52 = vector.shape_cast %50 : vector<1x256xi1> to vector<1x256xi1>
    %53 = vector.broadcast %52 : vector<1x256xi1> to vector<4x256xi1>
    %54 = arith.select %53, %45, %51 : vector<4x256xi1>, vector<4x256xf32>
    %c240_i32_16 = arith.constant 240 : i32
    %55 = tpu.dynamic_rotate %1 by %c240_i32_16 dim 1 : vector<4x256xf32>, i32 -> vector<4x256xf32>
    %c240_i32_17 = arith.constant 240 : i32
    %56 = vector.broadcast %c240_i32_17 : i32 to vector<1x256xi32>
    %57 = arith.cmpi slt, %2, %56 : vector<1x256xi32>
    %cst_18 = arith.constant 0.000000e+00 : f32
    %58 = vector.broadcast %cst_18 : f32 to vector<4x256xf32>
    %59 = vector.shape_cast %57 : vector<1x256xi1> to vector<1x256xi1>
    %60 = vector.broadcast %59 : vector<1x256xi1> to vector<4x256xi1>
    %61 = arith.select %60, %55, %58 : vector<4x256xi1>, vector<4x256xf32>
    %c239_i32 = arith.constant 239 : i32
    %62 = tpu.dynamic_rotate %1 by %c239_i32 dim 1 : vector<4x256xf32>, i32 -> vector<4x256xf32>
    %c240_i32_19 = arith.constant 240 : i32
    %63 = vector.broadcast %c240_i32_19 : i32 to vector<1x256xi32>
    %64 = arith.cmpi slt, %2, %63 : vector<1x256xi32>
    %c14_i32_20 = arith.constant 14 : i32
    %65 = vector.broadcast %c14_i32_20 : i32 to vector<1x256xi32>
    %66 = arith.cmpi sle, %3, %65 : vector<1x256xi32>
    %67 = arith.andi %64, %66 : vector<1x256xi1>
    %cst_21 = arith.constant 0.000000e+00 : f32
    %68 = vector.broadcast %cst_21 : f32 to vector<4x256xf32>
    %69 = vector.shape_cast %67 : vector<1x256xi1> to vector<1x256xi1>
    %70 = vector.broadcast %69 : vector<1x256xi1> to vector<4x256xi1>
    %71 = arith.select %70, %62, %68 : vector<4x256xi1>, vector<4x256xf32>
    %72 = tpu.concatenate %13, %20, %30, %37, %1, %44, %54, %61, %71 in 0 : vector<4x256xf32>, vector<4x256xf32>, vector<4x256xf32>, vector<4x256xf32>, vector<4x256xf32>, vector<4x256xf32>, vector<4x256xf32>, vector<4x256xf32>, vector<4x256xf32> -> vector<36x256xf32>
    %73 = arith.truncf %72 : vector<36x256xf32> to vector<36x256xbf16>
    %c0_22 = arith.constant 0 : index
    %c0_23 = arith.constant 0 : index
    %74 = vector.load %arg2[%c0_22, %c0_23] : memref<8x36xbf16, #tpu.memory_space<vmem>>, vector<8x36xbf16>
    %cst_24 = arith.constant dense<0.000000e+00> : vector<8x256xf32>
    %75 = tpu.matmul %74, %73, %cst_24 {dimension_numbers = #tpu.dot_dimension_numbers<[1], [0], [0], [1], [0, 0, 1, 1], [], []>} : vector<8x36xbf16>, vector<36x256xbf16>, vector<8x256xf32> -> vector<8x256xf32>
    %c0_25 = arith.constant 0 : index
    %c0_26 = arith.constant 0 : index
    %76 = vector.load %arg3[%c0_25, %c0_26] : memref<8x1xf32, #tpu.memory_space<vmem>>, vector<8x1xf32>
    %77 = vector.broadcast %76 : vector<8x1xf32> to vector<8x256xf32>
    %78 = arith.addf %75, %77 : vector<8x256xf32>
    %c0_27 = arith.constant 0 : index
    %c0_28 = arith.constant 0 : index
    %c0_29 = arith.constant 0 : index
    %79 = vector.load %arg5[%c0_27, %c0_28, %c0_29] : memref<1x8x256xf32, #tpu.memory_space<vmem>>, vector<1x8x256xf32>
    %80 = vector.shape_cast %79 : vector<1x8x256xf32> to vector<8x256xf32>
    %81 = vector.shape_cast %78 : vector<8x256xf32> to vector<1x8x256xf32>
    tpu.vector_store %arg5[%c0_27, %c0_28, %c0_29], %81 {strides = array<i32>} : memref<1x8x256xf32, #tpu.memory_space<vmem>>, vector<1x8x256xf32>,
    %cst_30 = arith.constant dense<0.000000e+00> : vector<8xf32>
    %82 = vector.multi_reduction <add>, %78, %cst_30 [1] : vector<8x256xf32> to vector<8xf32>
    %83 = vector.shape_cast %82 : vector<8xf32> to vector<8x1xf32>
    %c0_31 = arith.constant 0 : index
    %c0_32 = arith.constant 0 : index
    %c0_33 = arith.constant 0 : index
    %84 = vector.load %arg6[%c0_31, %c0_32, %c0_33] : memref<1x8x1xf32, #tpu.memory_space<vmem>>, vector<1x8x1xf32>
    %85 = vector.shape_cast %84 : vector<1x8x1xf32> to vector<8x1xf32>
    %86 = vector.shape_cast %83 : vector<8x1xf32> to vector<1x8x1xf32>
    tpu.vector_store %arg6[%c0_31, %c0_32, %c0_33], %86 {strides = array<i32>} : memref<1x8x1xf32, #tpu.memory_space<vmem>>, vector<1x8x1xf32>,
    %87 = arith.mulf %78, %78 : vector<8x256xf32>
    %cst_34 = arith.constant dense<0.000000e+00> : vector<8xf32>
    %88 = vector.multi_reduction <add>, %87, %cst_34 [1] : vector<8x256xf32> to vector<8xf32>
    %89 = vector.shape_cast %88 : vector<8xf32> to vector<8x1xf32>
    %c0_35 = arith.constant 0 : index
    %c0_36 = arith.constant 0 : index
    %c0_37 = arith.constant 0 : index
    %90 = vector.load %arg7[%c0_35, %c0_36, %c0_37] : memref<1x8x1xf32, #tpu.memory_space<vmem>>, vector<1x8x1xf32>
    %91 = vector.shape_cast %90 : vector<1x8x1xf32> to vector<8x1xf32>
    %92 = vector.shape_cast %89 : vector<8x1xf32> to vector<1x8x1xf32>
    tpu.vector_store %arg7[%c0_35, %c0_36, %c0_37], %92 {strides = array<i32>} : memref<1x8x1xf32, #tpu.memory_space<vmem>>, vector<1x8x1xf32>,
    return
  }
  func.func @transform_0(%arg0: i32) -> (i32, i32, i32) {
    %c0_i32 = arith.constant 0 : i32
    %c0_i32_0 = arith.constant 0 : i32
    %c0_i32_1 = arith.constant 0 : i32
    return %arg0, %c0_i32, %c0_i32_0 : i32, i32, i32
  }
  func.func @transform_1(%arg0: i32) -> (i32, i32) {
    %c0_i32 = arith.constant 0 : i32
    %c0_i32_0 = arith.constant 0 : i32
    %c0_i32_1 = arith.constant 0 : i32
    return %c0_i32, %c0_i32_0 : i32, i32
  }
  func.func @transform_2(%arg0: i32) -> (i32, i32) {
    %c0_i32 = arith.constant 0 : i32
    %c0_i32_0 = arith.constant 0 : i32
    %c0_i32_1 = arith.constant 0 : i32
    return %c0_i32, %c0_i32_0 : i32, i32
  }
  func.func @transform_3(%arg0: i32) -> (i32, i32) {
    %c0_i32 = arith.constant 0 : i32
    %c0_i32_0 = arith.constant 0 : i32
    %c0_i32_1 = arith.constant 0 : i32
    return %c0_i32, %c0_i32_0 : i32, i32
  }
  func.func @transform_4(%arg0: i32) -> (i32, i32, i32) {
    %c0_i32 = arith.constant 0 : i32
    %c0_i32_0 = arith.constant 0 : i32
    %c0_i32_1 = arith.constant 0 : i32
    return %arg0, %c0_i32, %c0_i32_0 : i32, i32, i32
  }
  func.func @transform_5(%arg0: i32) -> (i32, i32, i32) {
    %c0_i32 = arith.constant 0 : i32
    %c0_i32_0 = arith.constant 0 : i32
    %c0_i32_1 = arith.constant 0 : i32
    return %arg0, %c0_i32, %c0_i32_0 : i32, i32, i32
  }
  func.func @transform_6(%arg0: i32) -> (i32, i32, i32) {
    %c0_i32 = arith.constant 0 : i32
    %c0_i32_0 = arith.constant 0 : i32
    %c0_i32_1 = arith.constant 0 : i32
    return %arg0, %c0_i32, %c0_i32_0 : i32, i32, i32
  }
}

</mosaic_0001>

<bundles_post_ra>
// kernel: tpu_custom_call.1
= control target key start
LH: loop header
LB: loop body
LE: loop exit
PB: predicated region body
PF: predicated region fallthrough
CT: control target
= control target key end

     0   :  { %12 = vsyncpa [#allocation3], 0  ;;  %s1303_s0 = inlined_call_operand.hbm [shape: f32[2,4,256], index: 0, kind: input, shape index: {}]   ;;  %s1304_s1 = inlined_call_operand.vmem [shape: bf16[8,36], index: 1, kind: input, shape index: {}]   ;;  %s1305_s2 = inlined_call_operand.vmem [shape: f32[8,1], index: 2, kind: input, shape index: {}]   ;;  %s1306_s3 = inlined_call_operand.vmem [shape: s32[1,256], index: 3, kind: input, shape index: {}]   ;;  %s1307_s4 = inlined_call_operand.hbm [shape: f32[2,8,256], index: 4, kind: output, shape index: {0}]   ;;  %s1308_s5 = inlined_call_operand.vmem [shape: f32[2,8,1], index: 5, kind: output, shape index: {1}]   ;;  %s1309_s6 = inlined_call_operand.vmem [shape: f32[2,8,1], index: 6, kind: output, shape index: {2}]  }
   0x1   :  { %14 = vsyncpa [#allocation3 + $0x1], 0 }
   0x2   :  { %15 = vsyncpa [#allocation4], 0 }
   0x3   :  { %17 = vsyncpa [#allocation4 + $0x1], 0  ;;  %s979_s21 = smov 0   ;;  %s981_s22 = smov 0  }
   0x4   :  { %s983_s23 = smov 0   ;;  %s985_s24 = smov 0  }
   0x5 LB: > { %s1000_s25 = sadd.s32 4294967295, %s933_s24   ;;  %s720_s26 = sadd.s32 4294967294, %s933_s24   ;;  %s933_s24 = sphi %s985_s24, %s1349_s24   ;;  %s929_s23 = sphi %s983_s23, %s1348_s23   ;;  %s925_s22 = sphi %s981_s22, %s1347_s22   ;;  %s921_s21 = sphi %s979_s21, %s1346_s21  }
   0x6   : > { %s1004_s27 = sadd.s32 1, %s933_s24   ;;  %s30_s28 = sadd.s32 1, %s929_s23 }
   0x7   : > { %s27_s29 = ssub.s32 %s933_s24, %s1004_s27  ;;  %p37_p0 = scmp.ne.s32.totalorder %s929_s23, %s925_s22 }
   0x8   : > { %p28_p1 = scmp.eq.s32.totalorder %s27_s29, 0  ;;  %p38_p2 = scmp.eq.s32.totalorder %s933_s24, 0 }
   0x9   : > { %p43_p3 = scmp.ne.s32.totalorder %s925_s22, %s921_s21  ;;  %p44_p4 = scmp.eq.s32.totalorder %s1000_s25, 0 }
   0xa   : > { %s1016_s30 = scalar_select %p28_p1, %s929_s23, %s30_s28  }
   0xb   : > { %p1018_p5 = por %p38_p2, %p37_p0  ;;  %p1022_p6 = por %p44_p4, %p43_p3 }
   0xc   : > { %p130_p7 = scmp.eq.s32.totalorder %s1000_s25, 1  ;;  %p136_p8 = scmp.eq.s32.totalorder %s720_s26, 1 }
   0xd   : > { %p752_p10 = scmp.lt.s32.totalorder %s933_s24, 2  ;;  %s217_s11 = sand.u32 1, %s929_s23  }
   0xe   : > { %p1029_p11 = por %p130_p7, %p37_p0  ;;  %p1033_p12 = por %p136_p8, %p43_p3 }
   0xf   : > { %s738_s12 = sshll.u32 %s933_s24, 3  ;;  %s723_s13 = sshll.u32 %s217_s11, 3 }
  0x10   : > { %s226_s16 = scalar_lea.hbm %s1303_s0, %s738_s12  ;;  %s221_s18 = scalar_lea.vmem [#allocation2], %s723_s13 }
  0x11   : > { %s228_s17 = sshll.u32 %s226_s16, 4  ;;  %s230_s19 = sshll.u32 %s221_s18, 4  ;;  %s229_s17 = int_to_ptr.hbm [resolvable:$true] %s228_s17  ;;  %s231_s19 = int_to_ptr.vmem [resolvable:$true] %s230_s19 }
  0x12   : > { %p1044_p13 = pnand %p752_p10, %p1018_p5  ;;  %p726_p0 = scmp.ge.s32.totalorder %s933_s24, 1 }
  0x13   : > { %p235_p1 = scmp.lt.s32.totalorder %s933_s24, 3  ;;  %s218_s26 = scalar_lea.sflag [#allocation3], %s217_s11 }
  0x14   : > { %s837_s28 = sshra.s32 %s229_s17, 4  ;;  %p841_p3 = pneg %p1044_p13  ;;  %s838_s28 = int_to_ptr.hbm [resolvable:$true] %s837_s28 }
  0x15   : > { %s839_s29 = scalar_lea.hbm %s838_s28, 8  ;;  %s844_s7 = scalar_lea.hbm %s1303_s0, 16 }
  0x16   : > { %p840_p2 = scmp.ne.s32.totalorder %s838_s28, %s839_s29  ;;  %p845_p5 = scmp.lt.s32.totalorder %s838_s28, %s1303_s0 }
  0x17   : > { %p846_p8 = scmp.lt.s32.totalorder %s844_s7, %s839_s29 }
  0x18   : > { %p842_p4 = pnand %p841_p3, %p840_p2 }
  0x19   : > { %p847_p10 = por %p846_p8, %p845_p5 }
  0x1a   : > { %p843_p7 = pneg %p842_p4 }
  0x1c   : > { %p848_p9 = pnand %p847_p10, %p843_p7 }
  0x1e   : > { %851 = shalt.err (!%p848_p9)
}
  0x1f   : > { %747 = dma.hbm_to_vmem [thread:$0]  (!%p1044_p13), %s229_s17, 128, %s231_s19, %s218_s26  }
  0x20   : > { %p236_p2 = pnand %p726_p0, %p235_p1 }
  0x21   : > { %s1065_s11 = sand.u32 (!%p236_p2), 1, %s925_s22  }
  0x22   : > { %239 = sbr.rel (%p236_p2) target bundleno = 489 (0x1e9), region = 36  ;;  %s727_s16 = sshll.u32 (!%p236_p2), %s1065_s11, 3 }
  0x23   : > { %s242_s18 = scalar_lea.sflag (!%p236_p2), [#allocation3], %s1065_s11  ;;  %s245_s28 = scalar_lea.vmem (!%p236_p2), [#allocation2], %s727_s16 }
  0x27   : > { %912 = dma.done.wait (%p1022_p6), %s242_s18, 128  }
  0x28   : > { %914 = vsyncadd (%p1022_p6), %s242_s18, 4294967168  ;;  %v292_v0 = vld [vmem:[%s245_s28] sm:$0xff]  ;;  %s935_s8 = smov 127   ;;  %s936_s17 = smov 16   ;;  %v943_v25 = vmov 0   ;;  %v293_v27 = vlaneseq  ;;  %v515_v47 = vld [vmem:[%s1305_s2] sm:$0xff] }
  0x29   : > { %298 = vst [vmem:[#allocation1] ss:$2 sm:$0xff] %v292_v0  ;;  %s937_s19 = smov 113   ;;  %s938_s20 = smov 1   ;;  %835 = vset.pattern.permute.xlu2 %v943_v25  ;;  %836 = vset.pattern.permute.xlu0 %v943_v25  ;;  %v296_v26 = vld [vmem:[%s1306_s3] sm:$0x3] }
  0x2a   : > { %s939_s26 = smov 112   ;;  %s940_s29 = smov 111   ;;  %vm312_vm0 = vcmp.ge.s32.totalorder %v296_v26, 1  ;;  %v1078_v28 = vand.u32 127, %v293_v27  ;;  %vm358_vm1 = vcmp.le.s32.totalorder %v296_v26, 14 }
  0x2b   : > { %s941_s12 = smov 15   ;;  %s942_s13 = smov 17   ;;  %v1081_v29 = vsel %vm312_vm0, 1, %v943_v25  ;;  %v359_v33 = vsel %vm358_vm1, 1, %v943_v25 }
  0x2c   : > { %v1084_v31 = vadd.s32 128, %v1078_v28  ;;  %v315_v32 = vperm.slane %v1081_v29, 1  ;;  %v314_v34 = vperm.slane %v1081_v29, 0  ;;  %v361_v35 = vperm.slane %v359_v33, 1  ;;  %s572_s7 = scalar_lea.sflag [#allocation4], %s1065_s11  ;;  %s887_s28 = scalar_lea.hbm %s1307_s4, 32 }
  0x2d   : > { %v360_v38 = vperm.slane %v359_v33, 0  ;;  %vm337_vm9 = vcmp.lt.s32.totalorder %v1078_v28, 16  ;;  %vm310_vm10 = vcmp.ge.s32.totalorder %v1078_v28, 16  ;;  %vm383_vm12 = vcmp.lt.s32.totalorder %v1078_v28, 1 }
  0x2e   : > { %vm1310_vm2 = vcmp.lt.s32.totalorder %v1084_v31, 240  ;;  %vm1092_vm3 = vcmp.ne.s32.totalorder %v315_v32, 0  ;;  %vm1096_vm4 = vcmp.ne.s32.totalorder %v361_v35, 0  ;;  %vm1100_vm5 = vcmp.ne.s32.totalorder %v314_v34, 0 }
  0x2f   : > { %vm421_vm6 = vmand %vm1310_vm2, %vm1092_vm3  ;;  %vm362_vm7 = vcmp.ne.s32.totalorder %v360_v38, 0  ;;  %v422_v43 = vsel %vm1100_vm5, 1, %v943_v25  ;;  %vm399_vm13 = vcmp.lt.s32.totalorder %v1078_v28, 127  ;;  %vm439_vm14 = vcmp.lt.s32.totalorder %v1078_v28, 112 }
  0x30   : > { %v299_v1 = vld.sshfl [vmem:[#allocation1] sm:$0xff pattern:$0x75316420]  ;;  %v300_v2 = vld.sshfl [vmem:[#allocation1 + $0x8] sm:$0xff pattern:$0x75316420]  ;;  %vm461_vm8 = vmand %vm1310_vm2, %vm1096_vm4 }
  0x31   : > { %328 = vst [vmem:[#allocation1] ss:$2 sm:$0xff] %v292_v0  ;;  %v825_v9 = vpack.i.bf16 %v300_v2, %v299_v1  ;;  %v423_v44 = vsel %vm421_vm6, 1, %v943_v25  ;;  %vm364_vm11 = vmand %vm310_vm10, %vm362_vm7  ;;  %v462_v50 = vsel %vm362_vm7, 1, %v943_v25  ;;  %v463_v51 = vsel %vm461_vm8, 1, %v943_v25 }
  0x32   : > { %v424_v54 = vperm.slane %v422_v43, 0  ;;  %v425_v55 = vperm.slane %v423_v44, 0  ;;  %v464_v57 = vperm.slane %v462_v50, 0  ;;  %v465_v58 = vperm.slane %v463_v51, 0  ;;  %vm318_vm6 = vmand %vm310_vm10, %vm1100_vm5 }
  0x33   : > { %v366_v59 = vsel %vm364_vm11, 1, %v943_v25  ;;  %vm1135_vm15 = vcmp.eq.s32.totalorder %v360_v38, 1  ;;  %vm1140_vm1 = vcmp.eq.s32.totalorder %v361_v35, 1  ;;  %vm1154_vm8 = vcmp.eq.s32.totalorder %v314_v34, 1 }
  0x34   : > { %vm1150_vm7 = vcmp.eq.s32.totalorder %v424_v54, 1  ;;  %vm457_vm11 = vcmp.lt.s32.totalorder %v1078_v28, 111  ;;  %vm1169_vm5 = vcmp.eq.s32.totalorder %v464_v57, 1  ;;  %vm1173_vm2 = vcmp.eq.s32.totalorder %v465_v58, 1 }
  0x35   : > { %vm1177_vm0 = vcmp.eq.s32.totalorder %v425_v55, 1 }
  0x38   : > { %v329_v3 = vld.sshfl [vmem:[#allocation1] sm:$0xff pattern:$0x75316420]  ;;  %v330_v4 = vld.sshfl [vmem:[#allocation1 + $0x8] sm:$0xff pattern:$0x75316420] }
  0x39   : > { %346 = vst [vmem:[#allocation1] ss:$2 sm:$0xff] %v292_v0  ;;  %v795_v13 = vpack.i.bf16 %v330_v4, %v329_v3 }
  0x3b   : > { %796 = vrot.lane.b32.xlu2 %v795_v13, %s936_s17  ;;  %s728_s17 = sshll.u32 %s1065_s11, 4 }
  0x40   : > { %v347_v5 = vld.sshfl [vmem:[#allocation1] sm:$0xff pattern:$0x75316420]  ;;  %v348_v6 = vld.sshfl [vmem:[#allocation1 + $0x8] sm:$0xff pattern:$0x75316420] }
  0x41   : > { %374 = vst [vmem:[#allocation1] ss:$2 sm:$0xff] %v292_v0  ;;  %v830_v21 = vpack.i.bf16 %v348_v6, %v347_v5 }
  0x48   : > { %v375_v7 = vld.sshfl [vmem:[#allocation1] sm:$0xff pattern:$0x75316420]  ;;  %v376_v8 = vld.sshfl [vmem:[#allocation1 + $0x8] sm:$0xff pattern:$0x75316420] }
  0x49   : > { %390 = vst [vmem:[#allocation1] ss:$2 sm:$0xff] %v292_v0  ;;  %v800_v17 = vpack.i.bf16 %v376_v8, %v375_v7  ;;  %v368_v7 = vperm.slane %v366_v59, 0 }
  0x4b   : > { %801 = vrot.lane.b32.xlu2 %v800_v17, %s938_s20 }
  0x50   : > { %v391_v10 = vld.sshfl [vmem:[#allocation1] sm:$0xff pattern:$0x75316420]  ;;  %v392_v11 = vld.sshfl [vmem:[#allocation1 + $0x8] sm:$0xff pattern:$0x75316420] }
  0x51   : > { %406 = vst [vmem:[#allocation1] ss:$2 sm:$0xff] %v292_v0  ;;  %v805_v12 = vpack.i.bf16 %v392_v11, %v391_v10 }
  0x53   : > { %806 = vrot.lane.b32.xlu0 %v805_v12, %s935_s8  ;;  %518 = vperm.xlu2 %835, %v515_v47   ;;  %v320_v12 = vsel %vm318_vm6, 1, %v943_v25  ;;  %vm1196_vm6 = vcmp.eq.s32.totalorder %v368_v7, 1  ;;  %s739_s8 = sshll.u32 %s1000_s25, 4 }
  0x58   : > { %v407_v14 = vld.sshfl [vmem:[#allocation1] sm:$0xff pattern:$0x75316420]  ;;  %v408_v15 = vld.sshfl [vmem:[#allocation1 + $0x8] sm:$0xff pattern:$0x75316420] }
  0x59   : > { %v810_v16 = vpack.i.bf16 %v408_v15, %v407_v14  ;;  %430 = vst [vmem:[#allocation1] ss:$2 sm:$0xff] %v292_v0 }
  0x5b   : > { %811 = vrot.lane.b32.xlu1 %v810_v16, %s937_s19 }
  0x60   : > { %v431_v18 = vld.sshfl [vmem:[#allocation1] sm:$0xff pattern:$0x75316420]  ;;  %v432_v19 = vld.sshfl [vmem:[#allocation1 + $0x8] sm:$0xff pattern:$0x75316420] }
  0x61   : > { %v815_v20 = vpack.i.bf16 %v432_v19, %v431_v18  ;;  %448 = vst [vmem:[#allocation1] ss:$2 sm:$0xff] %v292_v0  ;;  %v367_v19 = vsel %vm1096_vm4, 1, %v943_v25  ;;  %vm1340_vm4 = vcmp.lt.s32.totalorder %v1078_v28, 113 }
  0x62   : > { %v369_v36 = vperm.slane %v367_v19, 0 }
  0x63   : > { %816 = vrot.lane.b32.xlu1 %v815_v20, %s939_s26  ;;  %v322_v20 = vperm.slane %v320_v12, 0  ;;  %s591_s26 = scalar_lea.hbm %s1307_s4, %s739_s8 }
  0x68   : > { %v449_v22 = vld.sshfl [vmem:[#allocation1] sm:$0xff pattern:$0x75316420]  ;;  %v450_v23 = vld.sshfl [vmem:[#allocation1 + $0x8] sm:$0xff pattern:$0x75316420] }
  0x69   : > { %v820_v24 = vpack.i.bf16 %v450_v23, %v449_v22  ;;  %482 = vst [vmem:[#allocation1] ss:$2 sm:$0xff] %v292_v0  ;;  %v321_v22 = vsel %vm1092_vm3, 1, %v943_v25  ;;  %vm1341_vm3 = vcmp.lt.s32.totalorder %v1084_v31, 240 }
  0x6b   : > { %821 = vrot.lane.b32.xlu0 %v820_v24, %s940_s29  ;;  %831 = vrot.lane.b32.xlu1 %v830_v21, %s941_s12  ;;  %s270_s29 = scalar_lea.vmem [#allocation5], %s728_s17 }
  0x6c   : > { %s593_s12 = sshll.u32 %s270_s29, 4  ;;  %s594_s12 = int_to_ptr.vmem [resolvable:$true] %s593_s12 }
  0x73   : > { %826 = vrot.lane.b32.xlu0 %v825_v9, %s942_s13  ;;  %s595_s13 = sshll.u32 %s591_s26, 4  ;;  %s596_s13 = int_to_ptr.hbm [resolvable:$true] %s595_s13 }
  0x74   : > { %s881_s14 = sshra.s32 %s596_s13, 4  ;;  %s882_s14 = int_to_ptr.hbm [resolvable:$true] %s881_s14 }
  0x75   : > { %s883_s15 = scalar_lea.hbm %s882_s14, 16  ;;  %p888_p0 = scmp.lt.s32.totalorder %s882_s14, %s1307_s4 }
  0x76   : > { %p884_p6 = scmp.ne.s32.totalorder %s882_s14, %s883_s15  ;;  %p889_p1 = scmp.lt.s32.totalorder %s887_s28, %s883_s15 }
  0x78   : > { %p885_p9 = pnand %p884_p6, %p1029_p11  ;;  %p890_p3 = por %p889_p1, %p888_p0 }
  0x7a   : > { %p886_p13 = pneg %p885_p9 }
  0x7c   : > { %p891_p4 = pnand %p890_p3, %p886_p13 }
  0x95   : > { %v797_v30 = vpop.permute.xlu2 %796 }
  0x96   : > { %v799_v45 = vunpack.i.h.bf16 %v797_v30  ;;  %v798_v46 = vunpack.i.l.bf16 %v797_v30 }
  0x98   : > { %v339_v56 = vsel %vm337_vm9, %v799_v45, %v798_v46  ;;  %v1160_v5 = vsel %vm337_vm9, %v798_v46, %v799_v45  ;;  %vm499_vm9 = vcmask 1043456   ;;  %v484_v46 = vld.sshfl [vmem:[#allocation1 + $0x8] sm:$0xff pattern:$0x75316420] }
  0x99   : > { %v1165_v6 = vsel %vm310_vm10, %v339_v56, 0.0  ;;  %vm525_vm10 = vcmask 1041408   ;;  %v473_v7 = vrot.slane %v1160_v5, 4 }
  0x9a   : > { %v472_v10 = vrot.slane %v1165_v6, 4  ;;  %v514_v6 = vld [vmem:[%s1304_s1] sm:$0xf] }
  0xa5   : > { %v802_v41 = vpop.permute.xlu2 %801 }
  0xa6   : > { %v804_v48 = vunpack.i.h.bf16 %v802_v41  ;;  %v803_v49 = vunpack.i.l.bf16 %v802_v41 }
  0xa8   : > { %v385_v61 = vsel %vm383_vm12, %v804_v48, %v803_v49  ;;  %v384_v18 = vsel %vm383_vm12, %v803_v49, %v804_v48  ;;  %vm1207_vm12 = vcmp.eq.s32.totalorder %v315_v32, 1  ;;  %v483_v32 = vld.sshfl [vmem:[#allocation1] sm:$0xff pattern:$0x75316420] }
  0xa9   : > { %v388_v16 = vsel %vm1154_vm8, %v385_v61, 0.0  ;;  %v389_v43 = vsel %vm1207_vm12, %v384_v18, 0.0 }
  0xaa   : > { %v478_v26 = vrot.slane %v388_v16, 4  ;;  %v479_v59 = vrot.slane %v389_v43, 4 }
  0xad   : > { %v519_v19 = vpop.permute.xlu2 %518 }
  0xc5   : > { %v807_v42 = vpop.permute.xlu0 %806 }
  0xc6   : > { %v809_v52 = vunpack.i.h.bf16 %v807_v42  ;;  %v808_v53 = vunpack.i.l.bf16 %v807_v42  ;;  %v323_v42 = vperm.slane %v321_v22, 0 }
  0xc8   : > { %v400_v0 = vsel %vm399_vm13, %v808_v53, %v809_v52  ;;  %v401_v8 = vsel %vm399_vm13, %v809_v52, %v808_v53  ;;  %vm355_vm13 = vcmp.lt.s32.totalorder %v1078_v28, 15 }
  0xc9   : > { %v404_v15 = vsel %vm1135_vm15, %v400_v0, 0.0  ;;  %v405_v24 = vsel %vm1140_vm1, %v401_v8, 0.0  ;;  %vm1342_vm15 = vmmov %vm1340_vm4  ;;  %vm325_vm1 = vcmp.eq.s32.totalorder %v323_v42, 1 }
  0xca   : > { %v489_v23 = vrot.slane %v404_v15, 4  ;;  %v490_v41 = vrot.slane %v405_v24, 4 }
  0xcc   : > { %v504_v56 = vsel %vm499_vm9, %v483_v32, %v489_v23  ;;  %v505_v58 = vsel %vm499_vm9, %v484_v46, %v490_v41 }
  0xcd   : > { %v1108_v40 = vpop.permute.xlu1 %811 }
  0xce   : > { %v814_v13 = vunpack.i.h.bf16 %v1108_v40  ;;  %v813_v14 = vunpack.i.l.bf16 %v1108_v40 }
  0xd0   : > { %v416_v35 = vsel %vm1340_vm4, %v813_v14, %v814_v13  ;;  %v417_v40 = vsel %vm1342_vm15, %v814_v13, %v813_v14 }
  0xd1   : > { %v428_v50 = vsel %vm1150_vm7, %v416_v35, 0.0  ;;  %v429_v57 = vsel %vm1177_vm0, %v417_v40, 0.0  ;;  %vm324_vm0 = vcmp.eq.s32.totalorder %v322_v20, 1  ;;  %vm521_vm7 = vcmask 293888  }
  0xd5   : > { %v817_v60 = vpop.permute.xlu1 %816 }
  0xd6   : > { %v819_v1 = vunpack.i.h.bf16 %v817_v60  ;;  %v818_v2 = vunpack.i.l.bf16 %v817_v60 }
  0xd8   : > { %v441_v17 = vsel %vm439_vm14, %v819_v1, %v818_v2  ;;  %v440_v30 = vsel %vm439_vm14, %v818_v2, %v819_v1  ;;  %vm1231_vm14 = vcmp.eq.s32.totalorder %v369_v36, 1 }
  0xd9   : > { %v447_v25 = vsel %vm1341_vm3, %v441_v17, 0.0  ;;  %v495_v44 = vrot.slane %v440_v30, 4 }
  0xda   : > { %v496_v47 = vrot.slane %v447_v25, 4 }
  0xdb   : > { %v506_v62 = vsel %vm499_vm9, %v428_v50, %v495_v44 }
  0xdc   : > { %v507_v63 = vsel %vm499_vm9, %v429_v57, %v496_v47  ;;  %v510_v8 = vpack.c.bf16 %v506_v62, %v504_v56 }
  0xdd   : > { %v822_v33 = vpop.permute.xlu0 %821  ;;  %v832_v34 = vpop.permute.xlu1 %831  ;;  %v511_v9 = vpack.c.bf16 %v507_v63, %v505_v58 }
  0xde   : > { %v824_v37 = vunpack.i.h.bf16 %v822_v33  ;;  %v823_v38 = vunpack.i.l.bf16 %v822_v33  ;;  %v834_v39 = vunpack.i.h.bf16 %v832_v34  ;;  %v833_v29 = vunpack.i.l.bf16 %v832_v34 }
  0xe0   : > { %v458_v45 = vsel %vm457_vm11, %v823_v38, %v824_v37  ;;  %v459_v31 = vsel %vm457_vm11, %v824_v37, %v823_v38  ;;  %v357_v54 = vsel %vm355_vm13, %v834_v39, %v833_v29  ;;  %v356_v55 = vsel %vm355_vm13, %v833_v29, %v834_v39 }
  0xe1   : > { %v468_v48 = vsel %vm1169_vm5, %v458_v45, 0.0  ;;  %v469_v49 = vsel %vm1173_vm2, %v459_v31, 0.0  ;;  %vm307_vm2 = vcmp.lt.s32.totalorder %v1078_v28, 17  ;;  %v372_v1 = vsel %vm1196_vm6, %v357_v54, 0.0 }
  0xe2   : > { %v512_v52 = vpack.c.bf16 %v468_v48, %v468_v48  ;;  %v513_v53 = vpack.c.bf16 %v469_v49, %v469_v49  ;;  %v373_v2 = vsel %vm1231_vm14, %v356_v55, 0.0  ;;  %v502_v12 = vsel %vm499_vm9, %v372_v1, %v478_v26 }
  0xe3   : > { %v503_v13 = vsel %vm499_vm9, %v373_v2, %v479_v59 }
  0xe4   : > { %v527_v60 = vsel %vm525_vm10, %v512_v52, 0  ;;  %v530_v61 = vsel %vm525_vm10, %v513_v53, 0 }
  0xe5   : > { %v827_v0 = vpop.permute.xlu0 %826  ;;  %537 = vmatpush.bf16.msra.mxu0 %v527_v60  ;;  %550 = vmatpush.bf16.msra.mxu1 %v530_v61 }
  0xe6   : > { %v829_v3 = vunpack.i.h.bf16 %v827_v0  ;;  %v828_v4 = vunpack.i.l.bf16 %v827_v0 }
  0xe8   : > { %v309_v11 = vsel %vm307_vm2, %v829_v3, %v828_v4  ;;  %v308_v28 = vsel %vm307_vm2, %v828_v4, %v829_v3 }
  0xe9   : > { %538 = vmatpush.bf16.msra.mxu0 %v510_v8  ;;  %551 = vmatpush.bf16.msra.mxu1 %v511_v9  ;;  %v326_v14 = vsel %vm324_vm0, %v309_v11, 0.0  ;;  %v327_v15 = vsel %vm325_vm1, %v308_v28, 0.0 }
  0xea   : > { %v500_v16 = vsel %vm499_vm9, %v326_v14, %v472_v10  ;;  %v501_v5 = vsel %vm499_vm9, %v327_v15, %v473_v7 }
  0xeb   : > { %v508_v17 = vpack.c.bf16 %v502_v12, %v500_v16  ;;  %v509_v18 = vpack.c.bf16 %v503_v13, %v501_v5 }
  0xed   : > { %539 = vmatpush.bf16.msra.mxu0 %v508_v17  ;;  %552 = vmatpush.bf16.msra.mxu1 %v509_v18 }
  0xf0   : > { %731 = vmatmul.msk.bf16.vlgmr.msra.gmra.mxu0 %vm521_vm7, %v514_v6  ;;  %732 = vmatmul.msk.bf16.vlgmr.msra.gmra.mxu1 %vm521_vm7, %v514_v6 }
 0x16d   : > { %v541_v20 = vpop.f32.mrf.mxu0  ;;  %v554_v21 = vpop.f32.mrf.mxu1 }
 0x16e   : > { %v542_v22 = vadd.f32 %v541_v20, %v519_v19  ;;  %v555_v23 = vadd.f32 %v554_v21, %v519_v19 }
 0x170   : > { %558 = vst [vmem:[%s270_s29] sm:$0xff] %v542_v22  ;;  %v560_v24 = vadd.f32 %v555_v23, %v542_v22  ;;  %v565_v26 = vmul.f32 %v542_v22, %v542_v22  ;;  %v566_v27 = vmul.f32 %v555_v23, %v555_v23 }
 0x171   : > { %559 = vst [vmem:[%s270_s29 + $0x8] sm:$0xff] %v555_v23 }
 0x172   : > { %561 = vadd.xlane.f32.xlu0 %v560_v24  ;;  %v567_v30 = vadd.f32 %v566_v27, %v565_v26 }
 0x173   : > { %894 = shalt.err (!%p891_p4)
}
 0x174   : > { %742 = dma.vmem_to_hbm [thread:$0]  (%p1029_p11), %s594_s12, 256, %s596_s13, %s572_s7   ;;  %568 = vadd.xlane.f32.xlu1 %v567_v30  ;;  %vm563_vm8 = vcmask 7168  }
 0x175   : > { %v543_v33 = vpop.f32.mrf.mxu0  ;;  %v556_v34 = vpop.f32.mrf.mxu1  ;;  %p283_p7 = scmp.lt.s32.totalorder %s1000_s25, 1 }
 0x177   : > { %s1351_s25 = smov (!%p283_p7, %s1000_s25), 1 }
 0x178   : > { %s729_s11 = sshll.u32 %s1351_s25, 3 }
 0x179   : > { %s286_s26 = scalar_lea.vmem %s1308_s5, %s729_s11  ;;  %s290_s15 = scalar_lea.vmem %s1309_s6, %s729_s11 }
 0x1e5   : > { %v562_v35 = vpop.xlane.xlu0 %561 }
 0x1e6   : > { %564 = vst.msk [vmem:[%s286_s26] sm:$0xff] %vm563_vm8, %v562_v35 }
 0x1e7   : > { %v569_v25 = vpop.xlane.xlu1 %568 }
 0x1e8   : > { %570 = vst.msk [vmem:[%s290_s15] sm:$0xff] %vm563_vm8, %v569_v25 }
 0x1e9 PF: > { %s613_s9 = sand.u32 1, %s921_s21   ;;  %p1345_p11 = scmp.ge.s32.totalorder %s933_s24, 2 }
 0x1ea   : > { %s614_s25 = scalar_lea.sflag [#allocation4], %s613_s9 }
 0x1eb   : > { %p749_p5 = pnand %p1345_p11, %p1033_p12 }
 0x1ed   : > { %p750_p8 = pneg %p749_p5 }
 0x1ef   : > { %916 = dma.done.wait (%p750_p8), %s614_s25, 256  }
 0x1f0   : > { %918 = vsyncadd (%p750_p8), %s614_s25, 4294967040  ;;  %p20_p10 = scmp.ge.s32.totalorder %s1004_s27, 4   ;;  %s1346_s21 = smov %s925_s22 }
 0x1f1   : > { %s1347_s22 = smov %s929_s23  ;;  %s1348_s23 = smov %s1016_s30 }
 0x1f2   : > { %s1349_s24 = smov %s1004_s27  ;;  %22 = sbr.rel (!%p20_p10) target bundleno = 5 (0x5), region = 105 }
 0x1f7   :  { %634 = vsyncpa [#allocation3], 1 }
 0x1f8   :  { %636 = vsyncpa [#allocation3 + $0x1], 1 }
 0x1f9   :  { %637 = vsyncpa [#allocation4], 1 }
 0x1fa   :  { %639 = vsyncpa [#allocation4 + $0x1], 1 }

</bundles_post_ra>
